<compile_context>
chip_gen: v5e
topology: v5e:2x2
jax: 0.10.0
libtpu: 0.0.40
codegen_flags: <defaults>
</compile_context>

<pallas_src>
import math
from functools import partial

import numpy as np
import jax
import jax.numpy as jnp
from jax.experimental import pallas as pl
from jax.experimental.pallas import tpu as pltpu


# ----------------------------------------------------------------------------
# In-kernel math helpers (traced inside the Pallas kernels; no captured consts)
# ----------------------------------------------------------------------------
def _degree(a):
    """Row-sum via MXU matmul against a tracer-built ones column.
    Exact even for bf16 0/1 adjacency because accumulation is forced to f32;
    keeps the (only 2) XLU ports free for the readout reductions."""
    ones_col = a[:, :1] * 0.0 + 1.0          # traced -> no captured constant
    return jnp.dot(a, ones_col, preferred_element_type=jnp.float32)


def _gcn(a_f32, deg, x, w, b):
    """relu(D_hat^-1/2 (A + I) D_hat^-1/2 (X @ W) + b); self-loop implicit
    (no (A+I) / eye / Laplacian temporaries are materialized)."""
    z = jnp.dot(x, w, preferred_element_type=jnp.float32)        # X @ W first
    dis = jax.lax.rsqrt(deg + 1.0)                                # self-loop deg >= 1
    zs = z * dis
    agg = jnp.dot(a_f32, zs, preferred_element_type=jnp.float32) + zs
    return jnp.maximum(dis * agg + b, 0.0)


def _info_score(a_f32, deg, h):
    """Lane-dense (1, N) node-information score
    sum_f | ((I - D^-1/2 A D^-1/2) h)_{i,f} |   (no self-loop in D here)."""
    dis = jnp.where(deg > 0.0, jax.lax.rsqrt(deg), 0.0)
    prop = dis * jnp.dot(a_f32, dis * h, preferred_element_type=jnp.float32)
    abs_lh = jnp.abs(h - prop)                                    # (N, F)
    ones_row = h[:1, :] * 0.0 + 1.0                               # traced (1, F)
    # contract the feature axis -> (1, N) row vector (MXU, lane-dense store)
    return jnp.einsum("of,nf->on", ones_row, abs_lh,
                      preferred_element_type=jnp.float32)


def _readout_slab(x, segments):
    """Per-graph [max | mean] readout packed into one lane-dense (B, 2F) slab.
    Graphs occupy contiguous statically-known node rows -> static slices and
    sublane reductions (no transpose, no (B,F,N) broadcast, no batch mask)."""
    rows = []
    for off, sz in segments:
        seg = x[off:off + sz, :]
        mx = jnp.max(seg, axis=0, keepdims=True)                  # gmp
        mn = jnp.sum(seg, axis=0, keepdims=True) * (1.0 / sz)     # gap (static 1/sz)
        rows.append(jnp.concatenate([mx, mn], axis=1))            # (1, 2F)
    return jnp.concatenate(rows, axis=0)                          # (B, 2F)


def _pool_adj(p16, a16):
    """Pooled adjacency P @ A @ P^T. Operands are exactly-representable 0/1
    bf16 (native MXU); accumulation in f32 -> bit-exact selection."""
    ap = jnp.dot(p16, a16, preferred_element_type=jnp.float32)    # entries 0/1
    return jnp.einsum("ij,kj->ik", ap.astype(jnp.bfloat16), p16,
                      preferred_element_type=jnp.float32)


# ----------------------------------------------------------------------------
# Pallas kernels — one fused kernel per conv stage
# ----------------------------------------------------------------------------
def _stage1_kernel(a_ref, x_ref, w_ref, b_ref, h_ref, s_ref):
    a16 = a_ref[...]                           # bf16 0/1 adjacency
    deg = _degree(a16)
    a = a16.astype(jnp.float32)
    h = _gcn(a, deg, x_ref[...], w_ref[...], b_ref[...])
    h_ref[...] = h
    s_ref[...] = _info_score(a, deg, h)


def _make_stage2_kernel(segments):
    def stage2_kernel(a0_ref, hprev_ref, p_ref, w_ref, b_ref,
                      h_ref, s_ref, a1_ref, x1_ref):
        p16 = p_ref[...]                       # (N1, N) bf16 one-hot selection
        a1 = _pool_adj(p16, a0_ref[...])       # (N1, N1) f32, values in {0,1}
        a1_ref[...] = a1.astype(jnp.bfloat16)  # exact; fed straight into stage 3
        x = jnp.dot(p16.astype(jnp.float32), hprev_ref[...],
                    preferred_element_type=jnp.float32)           # exact gather
        x1_ref[...] = _readout_slab(x, segments)                  # readout1 slab
        deg = _degree(a1)
        h2 = _gcn(a1, deg, x, w_ref[...], b_ref[...])             # conv2
        h_ref[...] = h2
        s_ref[...] = _info_score(a1, deg, h2)
    return stage2_kernel


def _make_stage3_kernel(segments):
    def stage3_kernel(a1_ref, hprev_ref, p_ref, w_ref, b_ref, x1_ref, out_ref):
        p16 = p_ref[...]                       # (N2, N1) bf16
        a2 = _pool_adj(p16, a1_ref[...])       # pooled from stage-2's a1 (not adj0)
        x = jnp.dot(p16.astype(jnp.float32), hprev_ref[...],
                    preferred_element_type=jnp.float32)
        x2 = _readout_slab(x, segments)                           # readout2 slab
        deg = _degree(a2)
        h3 = _gcn(a2, deg, x, w_ref[...], b_ref[...])             # conv3
        x3 = _readout_slab(h3, segments)                          # readout3 slab
        relu = lambda t: jnp.maximum(t, 0.0)
        out_ref[...] = relu(x1_ref[...]) + relu(x2) + relu(x3)    # (B, 2F)
    return stage3_kernel


# ----------------------------------------------------------------------------
# pallas_call wrappers — grid-less, full-array single-buffered VMEM blocks
# ----------------------------------------------------------------------------
_VMEM = pl.BlockSpec(memory_space=pltpu.MemorySpace.VMEM)


def stage1(adj16, x, w, b):
    n, fout = x.shape[0], w.shape[1]
    return pl.pallas_call(
        _stage1_kernel,
        in_specs=[_VMEM] * 4,
        out_specs=(_VMEM, _VMEM),
        out_shape=(jax.ShapeDtypeStruct((n, fout), jnp.float32),
                   jax.ShapeDtypeStruct((1, n), jnp.float32)),
    )(adj16, x, w, b)


def stage2(adj16, h_prev, p16, w, b, segments):
    nk, fout, bsz = p16.shape[0], w.shape[1], len(segments)
    return pl.pallas_call(
        _make_stage2_kernel(segments),
        in_specs=[_VMEM] * 5,
        out_specs=(_VMEM, _VMEM, _VMEM, _VMEM),
        out_shape=(jax.ShapeDtypeStruct((nk, fout), jnp.float32),
                   jax.ShapeDtypeStruct((1, nk), jnp.float32),
                   jax.ShapeDtypeStruct((nk, nk), jnp.bfloat16),
                   jax.ShapeDtypeStruct((bsz, 2 * fout), jnp.float32)),
    )(adj16, h_prev, p16, w, b)


def stage3(a1_16, h_prev, p16, w, b, x1, segments):
    fout, bsz = w.shape[1], len(segments)
    return pl.pallas_call(
        _make_stage3_kernel(segments),
        in_specs=[_VMEM] * 6,
        out_specs=_VMEM,
        out_shape=jax.ShapeDtypeStruct((bsz, 2 * fout), jnp.float32),
    )(a1_16, h_prev, p16, w, b, x1)


# ----------------------------------------------------------------------------
# Plain-JAX glue (static segment layout, batched top-k, one-hot selection)
# ----------------------------------------------------------------------------
def _segments(sizes):
    segs, off = [], 0
    for sz in sizes:
        segs.append((off, sz))
        off += sz
    return tuple(segs)


def topk_perm(score, graph_sizes, ratio):
    """HGPSLPool node selection: keep ceil(ratio*n_b) highest-score nodes per
    graph, done as ONE masked lax.top_k over all graphs (padded to max size)."""
    bsz, max_sz = len(graph_sizes), max(graph_sizes)
    ks = tuple(int(math.ceil(ratio * sz)) for sz in graph_sizes)
    kmax = max(ks)
    idx = np.zeros((bsz, max_sz), dtype=np.int32)
    valid = np.zeros((bsz, max_sz), dtype=bool)
    off = 0
    for b, sz in enumerate(graph_sizes):
        idx[b, :sz] = np.arange(off, off + sz)
        valid[b, :sz] = True
        off += sz
    idx = jnp.asarray(idx)
    padded = jnp.where(jnp.asarray(valid), score[idx], -jnp.inf)
    _, local = jax.lax.top_k(padded, kmax)                    # (B, kmax)
    global_idx = jnp.take_along_axis(idx, local, axis=1)      # global node ids
    perm = jnp.concatenate([global_idx[b, :ks[b]] for b in range(bsz)])
    return perm, ks


# ----------------------------------------------------------------------------
# Full model forward (mirrors MyModel.forward; ends at relu(x1)+relu(x2)+relu(x3))
# ----------------------------------------------------------------------------
@partial(jax.jit, static_argnames=("graph_sizes", "pooling_ratio"))
def model_forward(x, adj, graph_sizes, params, pooling_ratio=0.5):
    n0 = adj.shape[0]
    adj16 = adj.astype(jnp.bfloat16)          # 0/1 entries: bit-exact, half DMA

    # stage 1: conv1 + node-information score (one fused Pallas call)
    h1, s1 = stage1(adj16, x, params["w1"], params["b1"])
    perm1, sizes1 = topk_perm(s1[0], graph_sizes, pooling_ratio)
    p1 = jax.nn.one_hot(perm1, n0, dtype=jnp.bfloat16)

    # stage 2: pool1 gather + readout1 + conv2 + score, pooled adjacency emitted
    # TODO(synk): HGP-SL structure learning (sparse-attention / sparsemax edge
    # re-weighting) is not ported; the induced-subgraph adjacency is used.
    h2, s2, a1_16, x1 = stage2(adj16, h1, p1, params["w2"], params["b2"],
                               _segments(sizes1))
    perm2, sizes2 = topk_perm(s2[0], sizes1, pooling_ratio)
    p2 = jax.nn.one_hot(perm2, p1.shape[0], dtype=jnp.bfloat16)

    # stage 3: pool2 gather (from a1) + readout2 + conv3 + readout3 + combine
    # output is already the packed [gmp | gap] layout: relu(x1)+relu(x2)+relu(x3)
    return stage3(a1_16, h2, p2, params["w3"], params["b3"], x1,
                  _segments(sizes2))


# ----------------------------------------------------------------------------
# Demo
# ----------------------------------------------------------------------------
if __name__ == "__main__":
    num_features, nhid = 4, 32
    graph_sizes = (8, 8)          # batch of 2 graphs, 8 nodes each
    N = sum(graph_sizes)

    key = jax.random.PRNGKey(0)
    kx, ka, kw = jax.random.split(key, 3)

    # node features
    x = jax.random.normal(kx, (N, num_features), dtype=jnp.float32)

    # block-diagonal random symmetric adjacency (no self loops)
    blocks = []
    for kb, sz in zip(jax.random.split(ka, len(graph_sizes)), graph_sizes):
        bm = (jax.random.uniform(kb, (sz, sz)) > 0.5).astype(jnp.float32)
        bm = jnp.triu(bm, 1)
        blocks.append(bm + bm.T)
    adj = jax.scipy.linalg.block_diag(*blocks).astype(jnp.float32)

    # deterministic parameter init (glorot-uniform weights, zero bias)
    def glorot(k, shape):
        lim = math.sqrt(6.0 / (shape[0] + shape[1]))
        return jax.random.uniform(k, shape, jnp.float32, -lim, lim)

    kw1, kw2, kw3 = jax.random.split(kw, 3)
    params = {
        "w1": glorot(kw1, (num_features, nhid)), "b1": jnp.zeros((1, nhid), jnp.float32),
        "w2": glorot(kw2, (nhid, nhid)),         "b2": jnp.zeros((1, nhid), jnp.float32),
        "w3": glorot(kw3, (nhid, nhid)),         "b3": jnp.zeros((1, nhid), jnp.float32),
    }

    out = model_forward(x, adj, graph_sizes=graph_sizes, params=params,
                        pooling_ratio=0.5)
    jax.block_until_ready(out)
    assert out.shape == (len(graph_sizes), 2 * nhid)
    print("KERNEL_OK")
</pallas_src>

<mosaic_0001>
module attributes {stable_mosaic.version = 11 : i64} {
  func.func @_stage1_kernel(%arg0: memref<16x16xbf16, #tpu.memory_space<vmem>>, %arg1: memref<16x4xf32, #tpu.memory_space<vmem>>, %arg2: memref<4x32xf32, #tpu.memory_space<vmem>>, %arg3: memref<1x32xf32, #tpu.memory_space<vmem>>, %arg4: memref<16x32xf32, #tpu.memory_space<vmem>>, %arg5: memref<1x16xf32, #tpu.memory_space<vmem>>) attributes {dimension_semantics = [], scalar_prefetch = 0 : i64, scratch_operands = 0 : i64, tpu.core_type = #tpu.core_type<tc>} {
    %c0 = arith.constant 0 : index
    %c0_0 = arith.constant 0 : index
    %0 = vector.load %arg0[%c0, %c0_0] : memref<16x16xbf16, #tpu.memory_space<vmem>>, vector<16x16xbf16>
    %1 = vector.extract_strided_slice %0 {offsets = [0, 0], sizes = [16, 1], strides = [1, 1]} : vector<16x16xbf16> to vector<16x1xbf16>
    %cst = arith.constant 0.000000e+00 : bf16
    %2 = vector.broadcast %cst : bf16 to vector<16x1xbf16>
    %3 = arith.mulf %1, %2 : vector<16x1xbf16>
    %cst_1 = arith.constant 1.000000e+00 : bf16
    %4 = vector.broadcast %cst_1 : bf16 to vector<16x1xbf16>
    %5 = arith.addf %3, %4 : vector<16x1xbf16>
    %cst_2 = arith.constant dense<0.000000e+00> : vector<16x1xf32>
    %6 = tpu.matmul %0, %5, %cst_2 {dimension_numbers = #tpu.dot_dimension_numbers<[1], [0], [0], [1], [0, 0, 1, 1], [], []>} : vector<16x16xbf16>, vector<16x1xbf16>, vector<16x1xf32> -> vector<16x1xf32>
    %7 = arith.extf %0 : vector<16x16xbf16> to vector<16x16xf32>
    %c0_3 = arith.constant 0 : index
    %c0_4 = arith.constant 0 : index
    %8 = vector.load %arg1[%c0_3, %c0_4] : memref<16x4xf32, #tpu.memory_space<vmem>>, vector<16x4xf32>
    %c0_5 = arith.constant 0 : index
    %c0_6 = arith.constant 0 : index
    %9 = vector.load %arg2[%c0_5, %c0_6] : memref<4x32xf32, #tpu.memory_space<vmem>>, vector<4x32xf32>
    %c0_7 = arith.constant 0 : index
    %c0_8 = arith.constant 0 : index
    %10 = vector.load %arg3[%c0_7, %c0_8] : memref<1x32xf32, #tpu.memory_space<vmem>>, vector<1x32xf32>
    %cst_9 = arith.constant dense<0.000000e+00> : vector<16x32xf32>
    %11 = tpu.matmul %8, %9, %cst_9 {dimension_numbers = #tpu.dot_dimension_numbers<[1], [0], [0], [1], [0, 0, 1, 1], [], []>} : vector<16x4xf32>, vector<4x32xf32>, vector<16x32xf32> -> vector<16x32xf32>
    %cst_10 = arith.constant 1.000000e+00 : f32
    %12 = vector.broadcast %cst_10 : f32 to vector<16x1xf32>
    %13 = arith.addf %6, %12 : vector<16x1xf32>
    %14 = math.rsqrt %13 : vector<16x1xf32>
    %15 = vector.broadcast %14 : vector<16x1xf32> to vector<16x32xf32>
    %16 = arith.mulf %11, %15 : vector<16x32xf32>
    %cst_11 = arith.constant dense<0.000000e+00> : vector<16x32xf32>
    %17 = tpu.matmul %7, %16, %cst_11 {dimension_numbers = #tpu.dot_dimension_numbers<[1], [0], [0], [1], [0, 0, 1, 1], [], []>} : vector<16x16xf32>, vector<16x32xf32>, vector<16x32xf32> -> vector<16x32xf32>
    %18 = arith.addf %17, %16 : vector<16x32xf32>
    %19 = vector.broadcast %14 : vector<16x1xf32> to vector<16x32xf32>
    %20 = arith.mulf %19, %18 : vector<16x32xf32>
    %21 = vector.broadcast %10 : vector<1x32xf32> to vector<16x32xf32>
    %22 = arith.addf %20, %21 : vector<16x32xf32>
    %cst_12 = arith.constant 0.000000e+00 : f32
    %23 = vector.broadcast %cst_12 : f32 to vector<16x32xf32>
    %24 = arith.maximumf %22, %23 : vector<16x32xf32>
    %c0_13 = arith.constant 0 : index
    %c0_14 = arith.constant 0 : index
    %25 = vector.load %arg4[%c0_13, %c0_14] : memref<16x32xf32, #tpu.memory_space<vmem>>, vector<16x32xf32>
    tpu.vector_store %arg4[%c0_13, %c0_14], %24 {strides = array<i32>} : memref<16x32xf32, #tpu.memory_space<vmem>>, vector<16x32xf32>,
    %cst_15 = arith.constant 0.000000e+00 : f32
    %26 = vector.broadcast %cst_15 : f32 to vector<16x1xf32>
    %27 = arith.cmpf ogt, %6, %26 : vector<16x1xf32>
    %28 = math.rsqrt %6 : vector<16x1xf32>
    %cst_16 = arith.constant 0.000000e+00 : f32
    %29 = vector.broadcast %cst_16 : f32 to vector<16x1xf32>
    %30 = arith.select %27, %28, %29 : vector<16x1xi1>, vector<16x1xf32>
    %31 = vector.broadcast %30 : vector<16x1xf32> to vector<16x32xf32>
    %32 = arith.mulf %31, %24 : vector<16x32xf32>
    %cst_17 = arith.constant dense<0.000000e+00> : vector<16x32xf32>
    %33 = tpu.matmul %7, %32, %cst_17 {dimension_numbers = #tpu.dot_dimension_numbers<[1], [0], [0], [1], [0, 0, 1, 1], [], []>} : vector<16x16xf32>, vector<16x32xf32>, vector<16x32xf32> -> vector<16x32xf32>
    %34 = vector.broadcast %30 : vector<16x1xf32> to vector<16x32xf32>
    %35 = arith.mulf %34, %33 : vector<16x32xf32>
    %36 = arith.subf %24, %35 : vector<16x32xf32>
    %37 = math.absf %36 : vector<16x32xf32>
    %38 = vector.extract_strided_slice %24 {offsets = [0, 0], sizes = [1, 32], strides = [1, 1]} : vector<16x32xf32> to vector<1x32xf32>
    %cst_18 = arith.constant 0.000000e+00 : f32
    %39 = vector.broadcast %cst_18 : f32 to vector<1x32xf32>
    %40 = arith.mulf %38, %39 : vector<1x32xf32>
    %cst_19 = arith.constant 1.000000e+00 : f32
    %41 = vector.broadcast %cst_19 : f32 to vector<1x32xf32>
    %42 = arith.addf %40, %41 : vector<1x32xf32>
    "tpu.trace_start"() <{level = 10 : i32, message = "of,nf->on"}> : () -> ()
    %cst_20 = arith.constant dense<0.000000e+00> : vector<1x16xf32>
    %43 = tpu.matmul %42, %37, %cst_20 {dimension_numbers = #tpu.dot_dimension_numbers<[1], [1], [0], [0], [0, 0, 1, 0], [], []>} : vector<1x32xf32>, vector<16x32xf32>, vector<1x16xf32> -> vector<1x16xf32>
    "tpu.trace_stop"() : () -> ()
    %c0_21 = arith.constant 0 : index
    %c0_22 = arith.constant 0 : index
    %44 = vector.load %arg5[%c0_21, %c0_22] : memref<1x16xf32, #tpu.memory_space<vmem>>, vector<1x16xf32>
    tpu.vector_store %arg5[%c0_21, %c0_22], %43 {strides = array<i32>} : memref<1x16xf32, #tpu.memory_space<vmem>>, vector<1x16xf32>,
    return
  }
}

module attributes {stable_mosaic.version = 11 : i64} {
  func.func @stage2_kernel(%arg0: memref<16x16xbf16, #tpu.memory_space<vmem>>, %arg1: memref<16x32xf32, #tpu.memory_space<vmem>>, %arg2: memref<8x16xbf16, #tpu.memory_space<vmem>>, %arg3: memref<32x32xf32, #tpu.memory_space<vmem>>, %arg4: memref<1x32xf32, #tpu.memory_space<vmem>>, %arg5: memref<8x32xf32, #tpu.memory_space<vmem>>, %arg6: memref<1x8xf32, #tpu.memory_space<vmem>>, %arg7: memref<8x8xbf16, #tpu.memory_space<vmem>>, %arg8: memref<2x64xf32, #tpu.memory_space<vmem>>) attributes {dimension_semantics = [], scalar_prefetch = 0 : i64, scratch_operands = 0 : i64, tpu.core_type = #tpu.core_type<tc>} {
    %c0 = arith.constant 0 : index
    %c0_0 = arith.constant 0 : index
    %0 = vector.load %arg2[%c0, %c0_0] : memref<8x16xbf16, #tpu.memory_space<vmem>>, vector<8x16xbf16>
    %c0_1 = arith.constant 0 : index
    %c0_2 = arith.constant 0 : index
    %1 = vector.load %arg0[%c0_1, %c0_2] : memref<16x16xbf16, #tpu.memory_space<vmem>>, vector<16x16xbf16>
    %cst = arith.constant dense<0.000000e+00> : vector<8x16xf32>
    %2 = tpu.matmul %0, %1, %cst {dimension_numbers = #tpu.dot_dimension_numbers<[1], [0], [0], [1], [0, 0, 1, 1], [], []>} : vector<8x16xbf16>, vector<16x16xbf16>, vector<8x16xf32> -> vector<8x16xf32>
    %3 = arith.truncf %2 : vector<8x16xf32> to vector<8x16xbf16>
    "tpu.trace_start"() <{level = 10 : i32, message = "ij,kj->ik"}> : () -> ()
    %cst_3 = arith.constant dense<0.000000e+00> : vector<8x8xf32>
    %4 = tpu.matmul %3, %0, %cst_3 {dimension_numbers = #tpu.dot_dimension_numbers<[1], [1], [0], [0], [0, 0, 1, 0], [], []>} : vector<8x16xbf16>, vector<8x16xbf16>, vector<8x8xf32> -> vector<8x8xf32>
    "tpu.trace_stop"() : () -> ()
    %5 = arith.truncf %4 : vector<8x8xf32> to vector<8x8xbf16>
    %c0_4 = arith.constant 0 : index
    %c0_5 = arith.constant 0 : index
    %6 = vector.load %arg7[%c0_4, %c0_5] : memref<8x8xbf16, #tpu.memory_space<vmem>>, vector<8x8xbf16>
    tpu.vector_store %arg7[%c0_4, %c0_5], %5 {strides = array<i32>} : memref<8x8xbf16, #tpu.memory_space<vmem>>, vector<8x8xbf16>,
    %7 = arith.extf %0 : vector<8x16xbf16> to vector<8x16xf32>
    %c0_6 = arith.constant 0 : index
    %c0_7 = arith.constant 0 : index
    %8 = vector.load %arg1[%c0_6, %c0_7] : memref<16x32xf32, #tpu.memory_space<vmem>>, vector<16x32xf32>
    %cst_8 = arith.constant dense<0.000000e+00> : vector<8x32xf32>
    %9 = tpu.matmul %7, %8, %cst_8 {dimension_numbers = #tpu.dot_dimension_numbers<[1], [0], [0], [1], [0, 0, 1, 1], [], []>} : vector<8x16xf32>, vector<16x32xf32>, vector<8x32xf32> -> vector<8x32xf32>
    %10 = vector.extract_strided_slice %9 {offsets = [0, 0], sizes = [4, 32], strides = [1, 1]} : vector<8x32xf32> to vector<4x32xf32>
    %cst_9 = arith.constant dense<0xFF800000> : vector<32xf32>
    %11 = vector.multi_reduction <maximumf>, %10, %cst_9 [0] : vector<4x32xf32> to vector<32xf32>
    %12 = vector.shape_cast %11 : vector<32xf32> to vector<1x32xf32>
    %cst_10 = arith.constant dense<0.000000e+00> : vector<32xf32>
    %13 = vector.multi_reduction <add>, %10, %cst_10 [0] : vector<4x32xf32> to vector<32xf32>
    %14 = vector.shape_cast %13 : vector<32xf32> to vector<1x32xf32>
    %cst_11 = arith.constant 2.500000e-01 : f32
    %15 = vector.broadcast %cst_11 : f32 to vector<1x32xf32>
    %16 = arith.mulf %14, %15 : vector<1x32xf32>
    %17 = tpu.concatenate %12, %16 in 1 : vector<1x32xf32>, vector<1x32xf32> -> vector<1x64xf32>
    %18 = vector.extract_strided_slice %9 {offsets = [4, 0], sizes = [4, 32], strides = [1, 1]} : vector<8x32xf32> to vector<4x32xf32>
    %cst_12 = arith.constant dense<0xFF800000> : vector<32xf32>
    %19 = vector.multi_reduction <maximumf>, %18, %cst_12 [0] : vector<4x32xf32> to vector<32xf32>
    %20 = vector.shape_cast %19 : vector<32xf32> to vector<1x32xf32>
    %cst_13 = arith.constant dense<0.000000e+00> : vector<32xf32>
    %21 = vector.multi_reduction <add>, %18, %cst_13 [0] : vector<4x32xf32> to vector<32xf32>
    %22 = vector.shape_cast %21 : vector<32xf32> to vector<1x32xf32>
    %cst_14 = arith.constant 2.500000e-01 : f32
    %23 = vector.broadcast %cst_14 : f32 to vector<1x32xf32>
    %24 = arith.mulf %22, %23 : vector<1x32xf32>
    %25 = tpu.concatenate %20, %24 in 1 : vector<1x32xf32>, vector<1x32xf32> -> vector<1x64xf32>
    %26 = tpu.concatenate %17, %25 in 0 : vector<1x64xf32>, vector<1x64xf32> -> vector<2x64xf32>
    %c0_15 = arith.constant 0 : index
    %c0_16 = arith.constant 0 : index
    %27 = vector.load %arg8[%c0_15, %c0_16] : memref<2x64xf32, #tpu.memory_space<vmem>>, vector<2x64xf32>
    tpu.vector_store %arg8[%c0_15, %c0_16], %26 {strides = array<i32>} : memref<2x64xf32, #tpu.memory_space<vmem>>, vector<2x64xf32>,
    %28 = vector.extract_strided_slice %4 {offsets = [0, 0], sizes = [8, 1], strides = [1, 1]} : vector<8x8xf32> to vector<8x1xf32>
    %cst_17 = arith.constant 0.000000e+00 : f32
    %29 = vector.broadcast %cst_17 : f32 to vector<8x1xf32>
    %30 = arith.mulf %28, %29 : vector<8x1xf32>
    %cst_18 = arith.constant 1.000000e+00 : f32
    %31 = vector.broadcast %cst_18 : f32 to vector<8x1xf32>
    %32 = arith.addf %30, %31 : vector<8x1xf32>
    %cst_19 = arith.constant dense<0.000000e+00> : vector<8x1xf32>
    %33 = tpu.matmul %4, %32, %cst_19 {dimension_numbers = #tpu.dot_dimension_numbers<[1], [0], [0], [1], [0, 0, 1, 1], [], []>} : vector<8x8xf32>, vector<8x1xf32>, vector<8x1xf32> -> vector<8x1xf32>
    %c0_20 = arith.constant 0 : index
    %c0_21 = arith.constant 0 : index
    %34 = vector.load %arg3[%c0_20, %c0_21] : memref<32x32xf32, #tpu.memory_space<vmem>>, vector<32x32xf32>
    %c0_22 = arith.constant 0 : index
    %c0_23 = arith.constant 0 : index
    %35 = vector.load %arg4[%c0_22, %c0_23] : memref<1x32xf32, #tpu.memory_space<vmem>>, vector<1x32xf32>
    %cst_24 = arith.constant dense<0.000000e+00> : vector<8x32xf32>
    %36 = tpu.matmul %9, %34, %cst_24 {dimension_numbers = #tpu.dot_dimension_numbers<[1], [0], [0], [1], [0, 0, 1, 1], [], []>} : vector<8x32xf32>, vector<32x32xf32>, vector<8x32xf32> -> vector<8x32xf32>
    %cst_25 = arith.constant 1.000000e+00 : f32
    %37 = vector.broadcast %cst_25 : f32 to vector<8x1xf32>
    %38 = arith.addf %33, %37 : vector<8x1xf32>
    %39 = math.rsqrt %38 : vector<8x1xf32>
    %40 = vector.broadcast %39 : vector<8x1xf32> to vector<8x32xf32>
    %41 = arith.mulf %36, %40 : vector<8x32xf32>
    %cst_26 = arith.constant dense<0.000000e+00> : vector<8x32xf32>
    %42 = tpu.matmul %4, %41, %cst_26 {dimension_numbers = #tpu.dot_dimension_numbers<[1], [0], [0], [1], [0, 0, 1, 1], [], []>} : vector<8x8xf32>, vector<8x32xf32>, vector<8x32xf32> -> vector<8x32xf32>
    %43 = arith.addf %42, %41 : vector<8x32xf32>
    %44 = vector.broadcast %39 : vector<8x1xf32> to vector<8x32xf32>
    %45 = arith.mulf %44, %43 : vector<8x32xf32>
    %46 = vector.broadcast %35 : vector<1x32xf32> to vector<8x32xf32>
    %47 = arith.addf %45, %46 : vector<8x32xf32>
    %cst_27 = arith.constant 0.000000e+00 : f32
    %48 = vector.broadcast %cst_27 : f32 to vector<8x32xf32>
    %49 = arith.maximumf %47, %48 : vector<8x32xf32>
    %c0_28 = arith.constant 0 : index
    %c0_29 = arith.constant 0 : index
    %50 = vector.load %arg5[%c0_28, %c0_29] : memref<8x32xf32, #tpu.memory_space<vmem>>, vector<8x32xf32>
    tpu.vector_store %arg5[%c0_28, %c0_29], %49 {strides = array<i32>} : memref<8x32xf32, #tpu.memory_space<vmem>>, vector<8x32xf32>,
    %cst_30 = arith.constant 0.000000e+00 : f32
    %51 = vector.broadcast %cst_30 : f32 to vector<8x1xf32>
    %52 = arith.cmpf ogt, %33, %51 : vector<8x1xf32>
    %53 = math.rsqrt %33 : vector<8x1xf32>
    %cst_31 = arith.constant 0.000000e+00 : f32
    %54 = vector.broadcast %cst_31 : f32 to vector<8x1xf32>
    %55 = arith.select %52, %53, %54 : vector<8x1xi1>, vector<8x1xf32>
    %56 = vector.broadcast %55 : vector<8x1xf32> to vector<8x32xf32>
    %57 = arith.mulf %56, %49 : vector<8x32xf32>
    %cst_32 = arith.constant dense<0.000000e+00> : vector<8x32xf32>
    %58 = tpu.matmul %4, %57, %cst_32 {dimension_numbers = #tpu.dot_dimension_numbers<[1], [0], [0], [1], [0, 0, 1, 1], [], []>} : vector<8x8xf32>, vector<8x32xf32>, vector<8x32xf32> -> vector<8x32xf32>
    %59 = vector.broadcast %55 : vector<8x1xf32> to vector<8x32xf32>
    %60 = arith.mulf %59, %58 : vector<8x32xf32>
    %61 = arith.subf %49, %60 : vector<8x32xf32>
    %62 = math.absf %61 : vector<8x32xf32>
    %63 = vector.extract_strided_slice %49 {offsets = [0, 0], sizes = [1, 32], strides = [1, 1]} : vector<8x32xf32> to vector<1x32xf32>
    %cst_33 = arith.constant 0.000000e+00 : f32
    %64 = vector.broadcast %cst_33 : f32 to vector<1x32xf32>
    %65 = arith.mulf %63, %64 : vector<1x32xf32>
    %cst_34 = arith.constant 1.000000e+00 : f32
    %66 = vector.broadcast %cst_34 : f32 to vector<1x32xf32>
    %67 = arith.addf %65, %66 : vector<1x32xf32>
    "tpu.trace_start"() <{level = 10 : i32, message = "of,nf->on"}> : () -> ()
    %cst_35 = arith.constant dense<0.000000e+00> : vector<1x8xf32>
    %68 = tpu.matmul %67, %62, %cst_35 {dimension_numbers = #tpu.dot_dimension_numbers<[1], [1], [0], [0], [0, 0, 1, 0], [], []>} : vector<1x32xf32>, vector<8x32xf32>, vector<1x8xf32> -> vector<1x8xf32>
    "tpu.trace_stop"() : () -> ()
    %c0_36 = arith.constant 0 : index
    %c0_37 = arith.constant 0 : index
    %69 = vector.load %arg6[%c0_36, %c0_37] : memref<1x8xf32, #tpu.memory_space<vmem>>, vector<1x8xf32>
    tpu.vector_store %arg6[%c0_36, %c0_37], %68 {strides = array<i32>} : memref<1x8xf32, #tpu.memory_space<vmem>>, vector<1x8xf32>,
    return
  }
}

module attributes {stable_mosaic.version = 11 : i64} {
  func.func @stage3_kernel(%arg0: memref<8x8xbf16, #tpu.memory_space<vmem>>, %arg1: memref<8x32xf32, #tpu.memory_space<vmem>>, %arg2: memref<4x8xbf16, #tpu.memory_space<vmem>>, %arg3: memref<32x32xf32, #tpu.memory_space<vmem>>, %arg4: memref<1x32xf32, #tpu.memory_space<vmem>>, %arg5: memref<2x64xf32, #tpu.memory_space<vmem>>, %arg6: memref<2x64xf32, #tpu.memory_space<vmem>>) attributes {dimension_semantics = [], scalar_prefetch = 0 : i64, scratch_operands = 0 : i64, tpu.core_type = #tpu.core_type<tc>} {
    %c0 = arith.constant 0 : index
    %c0_0 = arith.constant 0 : index
    %0 = vector.load %arg2[%c0, %c0_0] : memref<4x8xbf16, #tpu.memory_space<vmem>>, vector<4x8xbf16>
    %c0_1 = arith.constant 0 : index
    %c0_2 = arith.constant 0 : index
    %1 = vector.load %arg0[%c0_1, %c0_2] : memref<8x8xbf16, #tpu.memory_space<vmem>>, vector<8x8xbf16>
    %cst = arith.constant dense<0.000000e+00> : vector<4x8xf32>
    %2 = tpu.matmul %0, %1, %cst {dimension_numbers = #tpu.dot_dimension_numbers<[1], [0], [0], [1], [0, 0, 1, 1], [], []>} : vector<4x8xbf16>, vector<8x8xbf16>, vector<4x8xf32> -> vector<4x8xf32>
    %3 = arith.truncf %2 : vector<4x8xf32> to vector<4x8xbf16>
    "tpu.trace_start"() <{level = 10 : i32, message = "ij,kj->ik"}> : () -> ()
    %cst_3 = arith.constant dense<0.000000e+00> : vector<4x4xf32>
    %4 = tpu.matmul %3, %0, %cst_3 {dimension_numbers = #tpu.dot_dimension_numbers<[1], [1], [0], [0], [0, 0, 1, 0], [], []>} : vector<4x8xbf16>, vector<4x8xbf16>, vector<4x4xf32> -> vector<4x4xf32>
    "tpu.trace_stop"() : () -> ()
    %5 = arith.extf %0 : vector<4x8xbf16> to vector<4x8xf32>
    %c0_4 = arith.constant 0 : index
    %c0_5 = arith.constant 0 : index
    %6 = vector.load %arg1[%c0_4, %c0_5] : memref<8x32xf32, #tpu.memory_space<vmem>>, vector<8x32xf32>
    %cst_6 = arith.constant dense<0.000000e+00> : vector<4x32xf32>
    %7 = tpu.matmul %5, %6, %cst_6 {dimension_numbers = #tpu.dot_dimension_numbers<[1], [0], [0], [1], [0, 0, 1, 1], [], []>} : vector<4x8xf32>, vector<8x32xf32>, vector<4x32xf32> -> vector<4x32xf32>
    %8 = vector.extract_strided_slice %7 {offsets = [0, 0], sizes = [2, 32], strides = [1, 1]} : vector<4x32xf32> to vector<2x32xf32>
    %cst_7 = arith.constant dense<0xFF800000> : vector<32xf32>
    %9 = vector.multi_reduction <maximumf>, %8, %cst_7 [0] : vector<2x32xf32> to vector<32xf32>
    %10 = vector.shape_cast %9 : vector<32xf32> to vector<1x32xf32>
    %cst_8 = arith.constant dense<0.000000e+00> : vector<32xf32>
    %11 = vector.multi_reduction <add>, %8, %cst_8 [0] : vector<2x32xf32> to vector<32xf32>
    %12 = vector.shape_cast %11 : vector<32xf32> to vector<1x32xf32>
    %cst_9 = arith.constant 5.000000e-01 : f32
    %13 = vector.broadcast %cst_9 : f32 to vector<1x32xf32>
    %14 = arith.mulf %12, %13 : vector<1x32xf32>
    %15 = tpu.concatenate %10, %14 in 1 : vector<1x32xf32>, vector<1x32xf32> -> vector<1x64xf32>
    %16 = vector.extract_strided_slice %7 {offsets = [2, 0], sizes = [2, 32], strides = [1, 1]} : vector<4x32xf32> to vector<2x32xf32>
    %cst_10 = arith.constant dense<0xFF800000> : vector<32xf32>
    %17 = vector.multi_reduction <maximumf>, %16, %cst_10 [0] : vector<2x32xf32> to vector<32xf32>
    %18 = vector.shape_cast %17 : vector<32xf32> to vector<1x32xf32>
    %cst_11 = arith.constant dense<0.000000e+00> : vector<32xf32>
    %19 = vector.multi_reduction <add>, %16, %cst_11 [0] : vector<2x32xf32> to vector<32xf32>
    %20 = vector.shape_cast %19 : vector<32xf32> to vector<1x32xf32>
    %cst_12 = arith.constant 5.000000e-01 : f32
    %21 = vector.broadcast %cst_12 : f32 to vector<1x32xf32>
    %22 = arith.mulf %20, %21 : vector<1x32xf32>
    %23 = tpu.concatenate %18, %22 in 1 : vector<1x32xf32>, vector<1x32xf32> -> vector<1x64xf32>
    %24 = tpu.concatenate %15, %23 in 0 : vector<1x64xf32>, vector<1x64xf32> -> vector<2x64xf32>
    %25 = vector.extract_strided_slice %4 {offsets = [0, 0], sizes = [4, 1], strides = [1, 1]} : vector<4x4xf32> to vector<4x1xf32>
    %cst_13 = arith.constant 0.000000e+00 : f32
    %26 = vector.broadcast %cst_13 : f32 to vector<4x1xf32>
    %27 = arith.mulf %25, %26 : vector<4x1xf32>
    %cst_14 = arith.constant 1.000000e+00 : f32
    %28 = vector.broadcast %cst_14 : f32 to vector<4x1xf32>
    %29 = arith.addf %27, %28 : vector<4x1xf32>
    %cst_15 = arith.constant dense<0.000000e+00> : vector<4x1xf32>
    %30 = tpu.matmul %4, %29, %cst_15 {dimension_numbers = #tpu.dot_dimension_numbers<[1], [0], [0], [1], [0, 0, 1, 1], [], []>} : vector<4x4xf32>, vector<4x1xf32>, vector<4x1xf32> -> vector<4x1xf32>
    %c0_16 = arith.constant 0 : index
    %c0_17 = arith.constant 0 : index
    %31 = vector.load %arg3[%c0_16, %c0_17] : memref<32x32xf32, #tpu.memory_space<vmem>>, vector<32x32xf32>
    %c0_18 = arith.constant 0 : index
    %c0_19 = arith.constant 0 : index
    %32 = vector.load %arg4[%c0_18, %c0_19] : memref<1x32xf32, #tpu.memory_space<vmem>>, vector<1x32xf32>
    %cst_20 = arith.constant dense<0.000000e+00> : vector<4x32xf32>
    %33 = tpu.matmul %7, %31, %cst_20 {dimension_numbers = #tpu.dot_dimension_numbers<[1], [0], [0], [1], [0, 0, 1, 1], [], []>} : vector<4x32xf32>, vector<32x32xf32>, vector<4x32xf32> -> vector<4x32xf32>
    %cst_21 = arith.constant 1.000000e+00 : f32
    %34 = vector.broadcast %cst_21 : f32 to vector<4x1xf32>
    %35 = arith.addf %30, %34 : vector<4x1xf32>
    %36 = math.rsqrt %35 : vector<4x1xf32>
    %37 = vector.broadcast %36 : vector<4x1xf32> to vector<4x32xf32>
    %38 = arith.mulf %33, %37 : vector<4x32xf32>
    %cst_22 = arith.constant dense<0.000000e+00> : vector<4x32xf32>
    %39 = tpu.matmul %4, %38, %cst_22 {dimension_numbers = #tpu.dot_dimension_numbers<[1], [0], [0], [1], [0, 0, 1, 1], [], []>} : vector<4x4xf32>, vector<4x32xf32>, vector<4x32xf32> -> vector<4x32xf32>
    %40 = arith.addf %39, %38 : vector<4x32xf32>
    %41 = vector.broadcast %36 : vector<4x1xf32> to vector<4x32xf32>
    %42 = arith.mulf %41, %40 : vector<4x32xf32>
    %43 = vector.broadcast %32 : vector<1x32xf32> to vector<4x32xf32>
    %44 = arith.addf %42, %43 : vector<4x32xf32>
    %cst_23 = arith.constant 0.000000e+00 : f32
    %45 = vector.broadcast %cst_23 : f32 to vector<4x32xf32>
    %46 = arith.maximumf %44, %45 : vector<4x32xf32>
    %47 = vector.extract_strided_slice %46 {offsets = [0, 0], sizes = [2, 32], strides = [1, 1]} : vector<4x32xf32> to vector<2x32xf32>
    %cst_24 = arith.constant dense<0xFF800000> : vector<32xf32>
    %48 = vector.multi_reduction <maximumf>, %47, %cst_24 [0] : vector<2x32xf32> to vector<32xf32>
    %49 = vector.shape_cast %48 : vector<32xf32> to vector<1x32xf32>
    %cst_25 = arith.constant dense<0.000000e+00> : vector<32xf32>
    %50 = vector.multi_reduction <add>, %47, %cst_25 [0] : vector<2x32xf32> to vector<32xf32>
    %51 = vector.shape_cast %50 : vector<32xf32> to vector<1x32xf32>
    %cst_26 = arith.constant 5.000000e-01 : f32
    %52 = vector.broadcast %cst_26 : f32 to vector<1x32xf32>
    %53 = arith.mulf %51, %52 : vector<1x32xf32>
    %54 = tpu.concatenate %49, %53 in 1 : vector<1x32xf32>, vector<1x32xf32> -> vector<1x64xf32>
    %55 = vector.extract_strided_slice %46 {offsets = [2, 0], sizes = [2, 32], strides = [1, 1]} : vector<4x32xf32> to vector<2x32xf32>
    %cst_27 = arith.constant dense<0xFF800000> : vector<32xf32>
    %56 = vector.multi_reduction <maximumf>, %55, %cst_27 [0] : vector<2x32xf32> to vector<32xf32>
    %57 = vector.shape_cast %56 : vector<32xf32> to vector<1x32xf32>
    %cst_28 = arith.constant dense<0.000000e+00> : vector<32xf32>
    %58 = vector.multi_reduction <add>, %55, %cst_28 [0] : vector<2x32xf32> to vector<32xf32>
    %59 = vector.shape_cast %58 : vector<32xf32> to vector<1x32xf32>
    %cst_29 = arith.constant 5.000000e-01 : f32
    %60 = vector.broadcast %cst_29 : f32 to vector<1x32xf32>
    %61 = arith.mulf %59, %60 : vector<1x32xf32>
    %62 = tpu.concatenate %57, %61 in 1 : vector<1x32xf32>, vector<1x32xf32> -> vector<1x64xf32>
    %63 = tpu.concatenate %54, %62 in 0 : vector<1x64xf32>, vector<1x64xf32> -> vector<2x64xf32>
    %c0_30 = arith.constant 0 : index
    %c0_31 = arith.constant 0 : index
    %64 = vector.load %arg5[%c0_30, %c0_31] : memref<2x64xf32, #tpu.memory_space<vmem>>, vector<2x64xf32>
    %cst_32 = arith.constant 0.000000e+00 : f32
    %65 = vector.broadcast %cst_32 : f32 to vector<2x64xf32>
    %66 = arith.maximumf %64, %65 : vector<2x64xf32>
    %cst_33 = arith.constant 0.000000e+00 : f32
    %67 = vector.broadcast %cst_33 : f32 to vector<2x64xf32>
    %68 = arith.maximumf %24, %67 : vector<2x64xf32>
    %69 = arith.addf %66, %68 : vector<2x64xf32>
    %cst_34 = arith.constant 0.000000e+00 : f32
    %70 = vector.broadcast %cst_34 : f32 to vector<2x64xf32>
    %71 = arith.maximumf %63, %70 : vector<2x64xf32>
    %72 = arith.addf %69, %71 : vector<2x64xf32>
    %c0_35 = arith.constant 0 : index
    %c0_36 = arith.constant 0 : index
    %73 = vector.load %arg6[%c0_35, %c0_36] : memref<2x64xf32, #tpu.memory_space<vmem>>, vector<2x64xf32>
    tpu.vector_store %arg6[%c0_35, %c0_36], %72 {strides = array<i32>} : memref<2x64xf32, #tpu.memory_space<vmem>>, vector<2x64xf32>,
    return
  }
}

</mosaic_0001>

<bundles_post_ra>
// kernel: model_forward.3
= control target key start
LH: loop header
LB: loop body
LE: loop exit
PB: predicated region body
PF: predicated region fallthrough
CT: control target
= control target key end

     0   :  { %vm38_vm0 = vcmask 130048   ;;  %vm67_vm1 = vcmask 1043456   ;;  %vm60_vm2 = vcmask 31744   ;;  %v303_v16 = vmov 0   ;;  %s381_s0 = inlined_call_operand.vmem [shape: bf16[16,16], index: 0, kind: input, shape index: {}]   ;;  %s382_s2 = inlined_call_operand.vmem [shape: f32[4,32], index: 2, kind: input, shape index: {}]   ;;  %s383_s1 = inlined_call_operand.vmem [shape: f32[16,4], index: 1, kind: input, shape index: {}]   ;;  %s384_s3 = inlined_call_operand.vmem [shape: f32[1,32], index: 3, kind: input, shape index: {}]   ;;  %s385_s4 = inlined_call_operand.vmem [shape: f32[16,32], index: 4, kind: output, shape index: {0}]   ;;  %s386_s5 = inlined_call_operand.vmem [shape: f32[1,16], index: 5, kind: output, shape index: {1}]  }
   0x1   :  { %v20_v0 = vld [vmem:[%s381_s0] sm:$0xff]   ;;  %v57_v15 = vld [vmem:[%s383_s1 + $0x8] sm:$0xff]  ;;  %293 = vset.pattern.permute.xlu1 %v303_v16  ;;  %292 = vset.pattern.permute.xlu0 %v303_v16 }
   0x2   :  { %v337_v1 = vunpack.c.l.bf16 %v20_v0  ;;  %v339_v2 = vunpack.c.h.bf16 %v20_v0  ;;  %v290_v12 = vld [vmem:[%s381_s0] sm:$0xff] }
   0x3   :  { %v58_v13 = vld [vmem:[%s382_s2] sm:$0xf] }
   0x4   :  { %v24_v3 = vmul.f32 0.0, %v337_v1  ;;  %v25_v4 = vmul.f32 0.0, %v339_v2  ;;  %280 = vmatpush.msk.msra.mxu1 %vm67_vm1, %v58_v13  ;;  %v56_v14 = vld [vmem:[%s383_s1] sm:$0xff] }
   0x5   :  { %281 = vmatmul.msk.f32.vlgmr.msra.gmra.mxu1 %vm60_vm2, %v56_v14  ;;  %v294_v59 = vld [vmem:[%s384_s3] ss:$0 sm:$0xff] }
   0x6   :  { %v26_v5 = vpack.c.bf16 %v24_v3, %v24_v3  ;;  %v27_v6 = vpack.c.bf16 %v25_v4, %v25_v4 }
   0x8   :  { %v28_v7 = vunpack.c.l.bf16 %v26_v5  ;;  %v29_v8 = vunpack.c.l.bf16 %v27_v6 }
   0xa   :  { %v30_v9 = vadd.f32 1.0, %v28_v7  ;;  %v31_v10 = vadd.f32 1.0, %v29_v8 }
   0xc   :  { %v32_v11 = vpack.c.bf16 %v31_v10, %v30_v9 }
   0xd   :  { %282 = vmatmul.msk.f32.gmra.mxu1 %vm60_vm2, %v57_v15  ;;  %vm166_vm2 = vcmask 261120  }
   0xe   :  { %49 = vmatpush.bf16.msra.mxu0 %v32_v11 }
  0x11   :  { %279 = vmatmul.msk.bf16.vlgmr.msra.gmra.mxu0 %vm38_vm0, %v290_v12 }
  0x82   :  { %v88_v51 = vpop.f32.mrf.mxu1 }
  0x8a   :  { %v91_v52 = vpop.f32.mrf.mxu1 }
  0x8e   :  { %v51_v17 = vpop.f32.mrf.mxu0 }
  0x8f   :  { %295 = vrsqrt.f32 %v51_v17  ;;  %v94_v18 = vadd.f32 1.0, %v51_v17  ;;  %vm177_vm11 = vweird.f32 %v51_v17  ;;  %vm169_vm14 = vcmp.gt.f32.partialorder %v51_v17, 0.0 }
  0x91   :  { %297 = vrsqrt.f32 %v94_v18  ;;  %vm102_vm15 = vweird.f32 %v94_v18 }
  0x95   :  { %v296_v19 = vpop.eup %295 }
  0x96   :  { %v53_v20 = vpop.f32.mrf.mxu0  ;;  %v172_v22 = vmul.f32 %v296_v19, %v51_v17  ;;  %vm178_vm10 = vweird.f32 %v296_v19 }
  0x97   :  { %v95_v21 = vadd.f32 1.0, %v53_v20  ;;  %299 = vrsqrt.f32 %v53_v20  ;;  %v298_v23 = vpop.eup %297  ;;  %vm187_vm4 = vweird.f32 %v53_v20  ;;  %vm170_vm7 = vcmp.gt.f32.partialorder %v53_v20, 0.0  ;;  %vm179_vm12 = vmor %vm177_vm11, %vm178_vm10 }
  0x98   :  { %v173_v25 = vmul.f32 %v296_v19, %v172_v22  ;;  %v97_v27 = vmul.f32 %v298_v23, %v94_v18  ;;  %vm103_vm13 = vweird.f32 %v298_v23 }
  0x99   :  { %301 = vrsqrt.f32 %v95_v21  ;;  %vm112_vm8 = vweird.f32 %v95_v21  ;;  %vm104_vm1 = vmor %vm102_vm15, %vm103_vm13 }
  0x9a   :  { %v174_v31 = vmul.f32 0.5, %v173_v25  ;;  %v98_v34 = vmul.f32 %v298_v23, %v97_v27 }
  0x9c   :  { %v175_v37 = vsub.f32 1.5, %v174_v31  ;;  %v99_v40 = vmul.f32 0.5, %v98_v34 }
  0x9d   :  { %v300_v24 = vpop.eup %299 }
  0x9e   :  { %v182_v26 = vmul.f32 %v300_v24, %v53_v20  ;;  %vm188_vm3 = vweird.f32 %v300_v24  ;;  %v176_v45 = vmul.f32 %v296_v19, %v175_v37  ;;  %v100_v46 = vsub.f32 1.5, %v99_v40 }
  0x9f   :  { %v302_v28 = vpop.eup %301  ;;  %vm189_vm6 = vmor %vm187_vm4, %vm188_vm3  ;;  %vm265_vm3 = vcmask 122880  }
  0xa0   :  { %v183_v29 = vmul.f32 %v300_v24, %v182_v26  ;;  %v107_v30 = vmul.f32 %v302_v28, %v95_v21  ;;  %vm113_vm5 = vweird.f32 %v302_v28  ;;  %v180_v47 = vsel %vm179_vm12, %v296_v19, %v176_v45 }
  0xa1   :  { %vm114_vm9 = vmor %vm112_vm8, %vm113_vm5  ;;  %v101_v48 = vmul.f32 %v298_v23, %v100_v46  ;;  %v191_v49 = vsel %vm169_vm14, %v180_v47, 0.0 }
  0xa2   :  { %v184_v32 = vmul.f32 0.5, %v183_v29  ;;  %v108_v33 = vmul.f32 %v302_v28, %v107_v30 }
  0xa3   :  { %v105_v50 = vsel %vm104_vm1, %v298_v23, %v101_v48 }
  0xa4   :  { %v185_v35 = vsub.f32 1.5, %v184_v32  ;;  %v109_v36 = vmul.f32 0.5, %v108_v33 }
  0xa6   :  { %v186_v38 = vmul.f32 %v300_v24, %v185_v35  ;;  %v110_v39 = vsub.f32 1.5, %v109_v36 }
  0xa8   :  { %v190_v41 = vsel %vm189_vm6, %v300_v24, %v186_v38  ;;  %v111_v42 = vmul.f32 %v302_v28, %v110_v39 }
  0xa9   :  { %v192_v43 = vsel %vm170_vm7, %v190_v41, 0.0 }
  0xaa   :  { %200 = vperm.xlu1 %293, %v192_v43   ;;  %v115_v44 = vsel %vm114_vm9, %v302_v28, %v111_v42 }
  0xab   :  { %123 = vperm.xlu0 %292, %v115_v44  }
  0xb2   :  { %195 = vperm.xlu1 %293, %v191_v49  }
  0xb3   :  { %118 = vperm.xlu0 %292, %v105_v50  }
 0x11c   :  { %v201_v63 = vpop.permute.xlu1 %200 }
 0x11d   :  { %v124_v53 = vpop.permute.xlu0 %123 }
 0x11e   :  { %v127_v54 = vmul.f32 %v124_v53, %v91_v52 }
 0x120   :  { %148 = vmatpush.msra.mxu2 %v127_v54 }
 0x124   :  { %v196_v8 = vpop.permute.xlu1 %195 }
 0x125   :  { %v119_v55 = vpop.permute.xlu0 %118 }
 0x126   :  { %v126_v56 = vmul.f32 %v119_v55, %v88_v51 }
 0x128   :  { %149 = vmatpush.msra.mxu2 %v126_v56 }
 0x129   :  { %283 = vmatmul.msk.f32.vlgmr.msra.gmra.mxu2 %vm38_vm0, %v337_v1 }
 0x131   :  { %284 = vmatmul.msk.f32.gmra.mxu2 %vm38_vm0, %v339_v2 }
 0x1ac   :  { %v151_v57 = vpop.f32.mrf.mxu2 }
 0x1ad   :  { %v152_v58 = vadd.f32 %v151_v57, %v126_v56 }
 0x1af   :  { %v157_v60 = vmul.f32 %v152_v58, %v119_v55 }
 0x1b1   :  { %v162_v61 = vadd.f32 %v294_v59, %v157_v60 }
 0x1b3   :  { %v164_v62 = vmax.f32 %v162_v61, 0.0 }
 0x1b4   :  { %v154_v0 = vpop.f32.mrf.mxu2 }
 0x1b5   :  { %v155_v3 = vadd.f32 %v154_v0, %v127_v54  ;;  %167 = vst.msk [vmem:[%s385_s4] sm:$0xff] %vm166_vm2, %v164_v62  ;;  %v203_v9 = vmul.f32 %v196_v8, %v164_v62  ;;  %v234_v17 = vmul.f32 0.0, %v164_v62 }
 0x1b7   :  { %v158_v4 = vmul.f32 %v155_v3, %v124_v53  ;;  %v235_v19 = vadd.f32 1.0, %v234_v17 }
 0x1b9   :  { %v163_v5 = vadd.f32 %v294_v59, %v158_v4 }
 0x1bb   :  { %v165_v6 = vmax.f32 %v163_v5, 0.0 }
 0x1bd   :  { %v204_v7 = vmul.f32 %v201_v63, %v165_v6  ;;  %168 = vst.msk [vmem:[%s385_s4 + $0x8] sm:$0xff] %vm166_vm2, %v165_v6 }
 0x1bf   :  { %219 = vmatpush.msra.mxu3 %v204_v7 }
 0x1c1   :  { %220 = vmatpush.msra.mxu3 %v203_v9 }
 0x1c2   :  { %285 = vmatmul.msk.f32.vlgmr.msra.gmra.mxu3 %vm38_vm0, %v337_v1 }
 0x1ca   :  { %286 = vmatmul.msk.f32.gmra.mxu3 %vm38_vm0, %v339_v2 }
 0x245   :  { %v222_v10 = vpop.f32.mrf.mxu3 }
 0x246   :  { %v228_v12 = vmul.f32 %v222_v10, %v196_v8 }
 0x248   :  { %v230_v15 = vsub.f32 %v164_v62, %v228_v12 }
 0x24a   :  { %v232_v18 = vand.u32 2147483647, %v230_v15 }
 0x24d   :  { %v225_v11 = vpop.f32.mrf.mxu3 }
 0x24e   :  { %v229_v13 = vmul.f32 %v225_v11, %v201_v63 }
 0x250   :  { %v231_v14 = vsub.f32 %v165_v6, %v229_v13 }
 0x252   :  { %v233_v16 = vand.u32 2147483647, %v231_v14 }
 0x254   :  { %287 = vmatpush.xpose.msk.msrb.mxu1 %vm166_vm2, %v233_v16 }
 0x258   :  { %288 = vmatpush.xpose.msk.msrb.mxu1 %vm166_vm2, %v232_v18 }
 0x25b   :  { %289 = vmatmul.msk.f32.vlgmr.msrb.gmra.mxu1 %vm166_vm2, %v235_v19 }
 0x2d8   :  { %v262_v1 = vpop.f32.mrf.mxu1 }
 0x2d9   :  { %266 = vst.msk [vmem:[%s386_s5] sm:$0x1] %vm265_vm3, %v262_v1 }

// kernel: model_forward.4
= control target key start
LH: loop header
LB: loop body
LE: loop exit
PB: predicated region body
PF: predicated region fallthrough
CT: control target
= control target key end

     0   :  { %vm34_vm0 = vcmask 130048   ;;  %vm97_vm1 = vcmask 257024   ;;  %vm69_vm2 = vcmask 60416   ;;  %vm152_vm3 = vcmask 64512   ;;  %s462_s0 = inlined_call_operand.vmem [shape: bf16[16,16], index: 0, kind: input, shape index: {}]   ;;  %s463_s2 = inlined_call_operand.vmem [shape: bf16[8,16], index: 2, kind: input, shape index: {}]   ;;  %s464_s1 = inlined_call_operand.vmem [shape: f32[16,32], index: 1, kind: input, shape index: {}]   ;;  %s465_s7 = inlined_call_operand.vmem [shape: bf16[8,8], index: 7, kind: output, shape index: {2}]   ;;  %s466_s3 = inlined_call_operand.vmem [shape: f32[32,32], index: 3, kind: input, shape index: {}]   ;;  %s467_s8 = inlined_call_operand.vmem [shape: f32[2,64], index: 8, kind: output, shape index: {3}]   ;;  %s468_s4 = inlined_call_operand.vmem [shape: f32[1,32], index: 4, kind: input, shape index: {}]   ;;  %s469_s5 = inlined_call_operand.vmem [shape: f32[8,32], index: 5, kind: output, shape index: {0}]   ;;  %s470_s6 = inlined_call_operand.vmem [shape: f32[1,8], index: 6, kind: output, shape index: {1}]  }
   0x1   :  { %v347_v0 = vld [vmem:[%s462_s0] sm:$0xff]  ;;  %v73_v3 = vld [vmem:[%s464_s1 + $0x8] sm:$0xff]  ;;  %s356_s0 = smov 32   ;;  %v179_v31 = vld [vmem:[%s466_s3 + $0x18] sm:$0xff]  ;;  %vm119_vm4 = vcmask 261124   ;;  %vm117_vm5 = vcmask 261120  }
   0x2   :  { %v25_v1 = vld [vmem:[%s463_s2] sm:$0xf]  ;;  %45 = vmatpush.bf16.msra.mxu0 %v347_v0  ;;  %91 = vmatpush.msra.mxu2 %v73_v3  ;;  %v178_v32 = vld [vmem:[%s466_s3 + $0x10] sm:$0xff]  ;;  %v177_v40 = vld [vmem:[%s466_s3 + $0x8] sm:$0xff]  ;;  %vm146_vm6 = vcmask 1040384   ;;  %v357_v52 = vmov 0  }
   0x3   :  { %v36_v2 = vsel %vm34_vm0, %v25_v1, 0  ;;  %v72_v4 = vld [vmem:[%s464_s1] sm:$0xff]  ;;  %v71_v5 = vunpack.c.l.bf16 %v25_v1  ;;  %350 = vset.pattern.permute.xlu0 %v357_v52  ;;  %vm148_vm7 = vcmask 517120   ;;  %vm316_vm15 = vcmask 57344  }
   0x4   :  { %62 = vmatpush.bf16.xpose.msra.mxu1 %v36_v2  ;;  %92 = vmatpush.msra.mxu2 %v72_v4  ;;  %v176_v43 = vld [vmem:[%s466_s3] sm:$0xff] }
   0x5   :  { %338 = vmatmul.msk.bf16.vlgmr.msra.gmra.mxu0 %vm34_vm0, %v25_v1  ;;  %340 = vmatmul.msk.f32.vlgmr.msra.gmra.mxu2 %vm34_vm0, %v71_v5 }
  0x82   :  { %v47_v6 = vpop.f32.mrf.mxu0 }
  0x83   :  { %v51_v7 = vpack.c.bf16 %v47_v6, %v47_v6 }
  0x85   :  { %339 = vmatmul.msk.bf16.vlgmr.msra.gmra.mxu1 %vm34_vm0, %v51_v7 }
  0x88   :  { %v94_v9 = vpop.f32.mrf.mxu2 }
  0x89   :  { %v105_v10 = vsel %vm97_vm1, %v94_v9, 0.0  ;;  %v128_v11 = vrot.slane %v94_v9, 4  ;;  %v120_v34 = vsel %vm119_vm4, %v94_v9, -inf  ;;  %v98_v35 = vsel %vm97_vm1, %v94_v9, -inf }
  0x8a   :  { %v49_v8 = vpop.f32.mrf.mxu0  ;;  %v106_v12 = vrot.slane %v105_v10, 4  ;;  %v121_v36 = vrot.slane %v120_v34, 4  ;;  %v99_v37 = vrot.slane %v98_v35, 4 }
  0x8b   :  { %v130_v13 = vsel %vm97_vm1, %v128_v11, 0.0 }
  0x8c   :  { %v131_v14 = vrot.slane %v130_v13, 4  ;;  %v107_v15 = vadd.f32 %v106_v12, %v105_v10  ;;  %v122_v38 = vmax.f32 %v120_v34, %v121_v36  ;;  %v100_v39 = vmax.f32 %v98_v35, %v99_v37 }
  0x8e   :  { %v132_v16 = vadd.f32 %v131_v14, %v130_v13  ;;  %v108_v17 = vrot.slane %v107_v15, 2  ;;  %v123_v41 = vrot.slane %v122_v38, 2  ;;  %v101_v45 = vrot.slane %v100_v39, 2 }
  0x90   :  { %v133_v18 = vrot.slane %v132_v16, 2  ;;  %v109_v20 = vadd.f32 %v108_v17, %v107_v15  ;;  %v124_v44 = vmax.f32 %v122_v38, %v123_v41  ;;  %v102_v47 = vmax.f32 %v100_v39, %v101_v45  ;;  %v351_v15 = vld [vmem:[%s468_s4] ss:$0 sm:$0xff] }
  0x92   :  { %v134_v19 = vadd.f32 %v133_v18, %v132_v16  ;;  %v110_v23 = vrot.slane %v109_v20, 1  ;;  %v125_v46 = vrot.slane %v124_v44, 1  ;;  %v103_v49 = vrot.slane %v102_v47, 1 }
  0x94   :  { %v135_v21 = vrot.slane %v134_v19, 1  ;;  %v111_v25 = vadd.f32 %v110_v23, %v109_v20  ;;  %v126_v48 = vmax.f32 %v124_v44, %v125_v46  ;;  %v104_v51 = vmax.f32 %v102_v47, %v103_v49 }
  0x96   :  { %v136_v22 = vadd.f32 %v135_v21, %v134_v19  ;;  %v112_v26 = vmul.f32 0.25, %v111_v25 }
  0x98   :  { %v137_v24 = vmul.f32 0.25, %v136_v22 }
  0x9a   :  { %139 = vrot.lane.b32.xlu1 %v137_v24, %s356_s0 }
  0xa2   :  { %114 = vrot.lane.b32.xlu1 %v112_v26, %s356_s0 }
 0x102   :  { %v417_v27 = vpop.f32.mrf.mxu1 }
 0x103   :  { %v68_v28 = vpack.c.bf16 %v417_v27, %v417_v27  ;;  %v150_v29 = vmul.f32 0.0, %v417_v27 }
 0x105   :  { %70 = vst.msk [vmem:[%s465_s7] sm:$0xf] %vm69_vm2, %v68_v28  ;;  %v151_v30 = vadd.f32 1.0, %v150_v29 }
 0x107   :  { %171 = vmatpush.msra.mxu3 %v151_v30 }
 0x108   :  { %341 = vmatmul.msk.f32.vlgmr.msra.gmra.mxu3 %vm152_vm3, %v417_v27 }
 0x109   :  { %195 = vmatpush.msrb.mxu3 %v179_v31 }
 0x10a   :  { %v66_v33 = vpop.f32.mrf.mxu1 }
 0x10b   :  { %196 = vmatpush.msrb.mxu3 %v178_v32 }
 0x10c   :  { %v140_v42 = vpop.permute.xlu1 %139 }
 0x10d   :  { %197 = vmatpush.msrb.mxu3 %v177_v40  ;;  %v142_v50 = vsel %vm117_vm5, %v126_v48, %v140_v42 }
 0x10e   :  { %v144_v53 = vrot.slane %v142_v50, 7 }
 0x10f   :  { %198 = vmatpush.msrb.mxu3 %v176_v43 }
 0x110   :  { %342 = vmatmul.msk.f32.vlgmr.msrb.gmra.mxu3 %vm117_vm5, %v94_v9 }
 0x114   :  { %v115_v54 = vpop.permute.xlu1 %114 }
 0x115   :  { %v118_v55 = vsel %vm117_vm5, %v104_v51, %v115_v54 }
 0x116   :  { %v147_v56 = vsel %vm146_vm6, %v118_v55, %v144_v53 }
 0x117   :  { %149 = vst.msk [vmem:[%s467_s8] sm:$0x3] %vm148_vm7, %v147_v56 }
 0x18b   :  { %v173_v57 = vpop.f32.mrf.mxu3 }
 0x18c   :  { %352 = vrsqrt.f32 %v173_v57  ;;  %v203_v58 = vadd.f32 1.0, %v173_v57  ;;  %vm254_vm12 = vweird.f32 %v173_v57  ;;  %vm247_vm14 = vcmp.gt.f32.partialorder %v173_v57, 0.0 }
 0x18e   :  { %354 = vrsqrt.f32 %v203_v58  ;;  %vm210_vm9 = vweird.f32 %v203_v58 }
 0x192   :  { %v353_v59 = vpop.eup %352 }
 0x193   :  { %v249_v60 = vmul.f32 %v353_v59, %v173_v57  ;;  %vm255_vm11 = vweird.f32 %v353_v59  ;;  %v200_v10 = vpop.f32.mrf.mxu3 }
 0x194   :  { %v355_v61 = vpop.eup %354  ;;  %vm256_vm13 = vmor %vm254_vm12, %vm255_vm11 }
 0x195   :  { %v205_v62 = vmul.f32 %v355_v61, %v203_v58  ;;  %v250_v63 = vmul.f32 %v353_v59, %v249_v60  ;;  %vm211_vm8 = vweird.f32 %v355_v61 }
 0x196   :  { %vm212_vm10 = vmor %vm210_vm9, %vm211_vm8 }
 0x197   :  { %v206_v0 = vmul.f32 %v355_v61, %v205_v62  ;;  %v251_v1 = vmul.f32 0.5, %v250_v63 }
 0x199   :  { %v207_v2 = vmul.f32 0.5, %v206_v0  ;;  %v252_v4 = vsub.f32 1.5, %v251_v1 }
 0x19b   :  { %v208_v3 = vsub.f32 1.5, %v207_v2  ;;  %v253_v7 = vmul.f32 %v353_v59, %v252_v4 }
 0x19d   :  { %v209_v5 = vmul.f32 %v355_v61, %v208_v3  ;;  %v257_v8 = vsel %vm256_vm13, %v353_v59, %v253_v7 }
 0x19e   :  { %v258_v9 = vsel %vm247_vm14, %v257_v8, 0.0 }
 0x19f   :  { %v213_v6 = vsel %vm212_vm10, %v355_v61, %v209_v5 }
 0x1a0   :  { %216 = vperm.xlu0 %350, %v213_v6  }
 0x1a8   :  { %261 = vperm.xlu0 %350, %v258_v9  }
 0x212   :  { %v217_v11 = vpop.permute.xlu0 %216 }
 0x213   :  { %v219_v12 = vmul.f32 %v217_v11, %v200_v10 }
 0x215   :  { %235 = vmatpush.msrb.mxu2 %v219_v12 }
 0x216   :  { %343 = vmatmul.msk.f32.vlgmr.msrb.gmra.mxu2 %vm152_vm3, %v417_v27 }
 0x21a   :  { %v262_v19 = vpop.permute.xlu0 %261 }
 0x299   :  { %v237_v13 = vpop.f32.mrf.mxu2 }
 0x29a   :  { %v238_v14 = vadd.f32 %v237_v13, %v219_v12 }
 0x29c   :  { %v240_v16 = vmul.f32 %v238_v14, %v217_v11 }
 0x29e   :  { %v244_v17 = vadd.f32 %v351_v15, %v240_v16 }
 0x2a0   :  { %v245_v18 = vmax.f32 %v244_v17, 0.0 }
 0x2a2   :  { %246 = vst.msk [vmem:[%s469_s5] sm:$0xff] %vm117_vm5, %v245_v18  ;;  %v264_v20 = vmul.f32 %v262_v19, %v245_v18  ;;  %v288_v24 = vmul.f32 0.0, %v245_v18 }
 0x2a4   :  { %280 = vmatpush.msra.mxu3 %v264_v20  ;;  %v289_v26 = vadd.f32 1.0, %v288_v24 }
 0x2a5   :  { %344 = vmatmul.msk.f32.vlgmr.msra.gmra.mxu3 %vm152_vm3, %v417_v27 }
 0x328   :  { %v282_v21 = vpop.f32.mrf.mxu3 }
 0x329   :  { %v285_v22 = vmul.f32 %v282_v21, %v262_v19 }
 0x32b   :  { %v286_v23 = vsub.f32 %v245_v18, %v285_v22 }
 0x32d   :  { %v287_v25 = vand.u32 2147483647, %v286_v23 }
 0x32f   :  { %345 = vmatpush.xpose.msk.msrb.mxu0 %vm117_vm5, %v287_v25 }
 0x332   :  { %346 = vmatmul.msk.f32.vlgmr.msrb.gmra.mxu0 %vm117_vm5, %v289_v26 }
 0x3af   :  { %v313_v28 = vpop.f32.mrf.mxu0 }
 0x3b0   :  { %317 = vst.msk [vmem:[%s470_s6] sm:$0x1] %vm316_vm15, %v313_v28 }

// kernel: model_forward.5
= control target key start
LH: loop header
LB: loop body
LE: loop exit
PB: predicated region body
PF: predicated region fallthrough
CT: control target
= control target key end

     0   :  { %vm31_vm0 = vcmask 1043456   ;;  %vm27_vm1 = vcmask 64512   ;;  %s449_s0 = inlined_call_operand.vmem [shape: bf16[8,8], index: 0, kind: input, shape index: {}]   ;;  %s450_s1 = inlined_call_operand.vmem [shape: f32[8,32], index: 1, kind: input, shape index: {}]   ;;  %s451_s2 = inlined_call_operand.vmem [shape: bf16[4,8], index: 2, kind: input, shape index: {}]   ;;  %s452_s3 = inlined_call_operand.vmem [shape: f32[32,32], index: 3, kind: input, shape index: {}]   ;;  %s453_s4 = inlined_call_operand.vmem [shape: f32[1,32], index: 4, kind: input, shape index: {}]   ;;  %s454_s5 = inlined_call_operand.vmem [shape: f32[2,64], index: 5, kind: input, shape index: {}]   ;;  %s455_s6 = inlined_call_operand.hbm [shape: f32[2,64], index: 6, kind: output, shape index: {}]  }
   0x1   :  { %v26_v0 = vld [vmem:[%s449_s0] sm:$0xf] }
   0x2   :  { %v25_v1 = vld [vmem:[%s451_s2] sm:$0x3]  ;;  %v33_v2 = vsel %vm31_vm0, %v26_v0, 0 }
   0x3   :  { %v29_v3 = vsel %vm27_vm1, %v25_v1, 0 }
   0x4   :  { %11 = vsyncpa [#allocation3], 0  ;;  %42 = vmatpush.bf16.msra.mxu0 %v33_v2  ;;  %59 = vmatpush.bf16.xpose.msra.mxu1 %v29_v3  ;;  %v66_v4 = vld [vmem:[%s450_s1] sm:$0xff]  ;;  %v65_v5 = vunpack.c.l.bf16 %v25_v1  ;;  %vm90_vm2 = vcmask 254976   ;;  %v146_v12 = vld [vmem:[%s452_s3 + $0x18] sm:$0xff]  ;;  %vm110_vm3 = vcmask 261120  }
   0x5   :  { %85 = vmatpush.msra.mxu2 %v66_v4  ;;  %v145_v13 = vld [vmem:[%s452_s3 + $0x10] sm:$0xff]  ;;  %162 = vmatpush.msra.mxu3 %v146_v12  ;;  %v144_v15 = vld [vmem:[%s452_s3 + $0x8] sm:$0xff]  ;;  %v143_v17 = vld [vmem:[%s452_s3] sm:$0xff]  ;;  %s354_s8 = smov 32   ;;  %vm170_vm4 = vcmask 31744   ;;  %v355_v26 = vmov 0  }
   0x6   :  { %315 = vmatmul.msk.f32.vlgmr.msra.gmra.mxu2 %vm27_vm1, %v65_v5  ;;  %324 = vset.pattern.permute.xlu0 %v355_v26  ;;  %v325_v50 = vld [vmem:[%s453_s4] ss:$0 sm:$0xff]  ;;  %vm112_vm8 = vcmask 257026   ;;  %vm139_vm9 = vcmask 1040384   ;;  %s356_s11 = smov [#allocation2]   ;;  %s304_s15 = sshll.u32 %s455_s6, 4  ;;  %s305_s15 = int_to_ptr.hbm [resolvable:$true] %s304_s15 }
   0x7   :  { %313 = vmatmul.msk.bf16.vlgmr.msra.gmra.mxu0 %vm27_vm1, %v25_v1  ;;  %163 = vmatpush.msra.mxu3 %v145_v13  ;;  %s302_s12 = sshll.u32 %s356_s11, 4  ;;  %vm295_vm10 = vcmask 517120   ;;  %s303_s12 = int_to_ptr.vmem [resolvable:$true] %s302_s12 }
   0x9   :  { %164 = vmatpush.msra.mxu3 %v144_v15 }
   0xb   :  { %165 = vmatpush.msra.mxu3 %v143_v17 }
  0x84   :  { %v44_v6 = vpop.f32.mrf.mxu0 }
  0x85   :  { %v48_v7 = vpack.c.bf16 %v44_v6, %v44_v6 }
  0x87   :  { %314 = vmatmul.msk.bf16.vlgmr.msra.gmra.mxu1 %vm27_vm1, %v48_v7 }
  0x89   :  { %v402_v9 = vpop.f32.mrf.mxu2 }
  0x8a   :  { %v98_v10 = vsel %vm90_vm2, %v402_v9, 0.0  ;;  %316 = vmatmul.msk.f32.vlgmr.msra.gmra.mxu3 %vm110_vm3, %v402_v9  ;;  %v121_v27 = vrot.slane %v402_v9, 2  ;;  %v113_v7 = vsel %vm112_vm8, %v402_v9, -inf }
  0x8b   :  { %v99_v11 = vrot.slane %v98_v10, 4 }
  0x8c   :  { %v46_v8 = vpop.f32.mrf.mxu0  ;;  %v123_v29 = vsel %vm90_vm2, %v121_v27, 0.0 }
  0x8d   :  { %v100_v14 = vadd.f32 %v99_v11, %v98_v10  ;;  %v124_v31 = vrot.slane %v123_v29, 4  ;;  %v114_v8 = vrot.slane %v113_v7, 4  ;;  %v91_v10 = vsel %vm90_vm2, %v402_v9, -inf }
  0x8e   :  { %v92_v11 = vrot.slane %v91_v10, 4 }
  0x8f   :  { %v101_v16 = vrot.slane %v100_v14, 2  ;;  %v125_v32 = vadd.f32 %v124_v31, %v123_v29  ;;  %v115_v12 = vmax.f32 %v113_v7, %v114_v8 }
  0x91   :  { %v102_v18 = vadd.f32 %v101_v16, %v100_v14  ;;  %v126_v35 = vrot.slane %v125_v32, 2  ;;  %v93_v14 = vmax.f32 %v91_v10, %v92_v11  ;;  %v116_v15 = vrot.slane %v115_v12, 2 }
  0x93   :  { %v103_v19 = vrot.slane %v102_v18, 1  ;;  %v127_v38 = vadd.f32 %v126_v35, %v125_v32 }
  0x95   :  { %v104_v20 = vadd.f32 %v103_v19, %v102_v18  ;;  %v128_v41 = vrot.slane %v127_v38, 1  ;;  %v94_v18 = vrot.slane %v93_v14, 2  ;;  %v117_v19 = vmax.f32 %v115_v12, %v116_v15 }
  0x97   :  { %v105_v21 = vmul.f32 0.5, %v104_v20  ;;  %v129_v43 = vadd.f32 %v128_v41, %v127_v38 }
  0x99   :  { %107 = vrot.lane.b32.xlu1 %v105_v21, %s354_s8  ;;  %v130_v44 = vmul.f32 0.5, %v129_v43 }
 0x104   :  { %v61_v22 = vpop.f32.mrf.mxu1 }
 0x105   :  { %v141_v23 = vmul.f32 0.0, %v61_v22 }
 0x107   :  { %v142_v24 = vadd.f32 1.0, %v141_v23  ;;  %v118_v23 = vrot.slane %v117_v19, 1 }
 0x109   :  { %317 = vmatpush.msk.msrb.mxu2 %vm31_vm0, %v142_v24 }
 0x10a   :  { %318 = vmatmul.msk.f32.vlgmr.msrb.gmra.mxu2 %vm170_vm4, %v61_v22 }
 0x10b   :  { %v108_v31 = vpop.permute.xlu1 %107 }
 0x10c   :  { %v63_v25 = vpop.f32.mrf.mxu1 }
 0x10d   :  { %v167_v45 = vpop.f32.mrf.mxu3 }
 0x18d   :  { %v194_v28 = vpop.f32.mrf.mxu2 }
 0x18e   :  { %v195_v30 = vadd.f32 1.0, %v194_v28  ;;  %v119_v28 = vmax.f32 %v117_v19, %v118_v23 }
 0x190   :  { %326 = vrsqrt.f32 %v195_v30  ;;  %vm203_vm6 = vweird.f32 %v195_v30 }
 0x196   :  { %v327_v33 = vpop.eup %326 }
 0x197   :  { %v198_v34 = vmul.f32 %v327_v33, %v195_v30  ;;  %vm204_vm5 = vweird.f32 %v327_v33 }
 0x198   :  { %vm205_vm7 = vmor %vm203_vm6, %vm204_vm5 }
 0x199   :  { %v199_v36 = vmul.f32 %v327_v33, %v198_v34 }
 0x19b   :  { %v200_v37 = vmul.f32 0.5, %v199_v36 }
 0x19d   :  { %v201_v39 = vsub.f32 1.5, %v200_v37 }
 0x19f   :  { %v202_v40 = vmul.f32 %v327_v33, %v201_v39  ;;  %v289_v39 = vld [vmem:[%s454_s5] sm:$0x3] }
 0x1a1   :  { %v206_v42 = vsel %vm205_vm7, %v327_v33, %v202_v40 }
 0x1a2   :  { %209 = vperm.xlu0 %324, %v206_v42  }
 0x1aa   :  { %132 = vrot.lane.b32.xlu0 %v130_v44, %s354_s8 }
 0x214   :  { %v210_v46 = vpop.permute.xlu0 %209 }
 0x215   :  { %v212_v47 = vmul.f32 %v210_v46, %v167_v45 }
 0x217   :  { %319 = vmatpush.msk.msrb.mxu3 %vm31_vm0, %v212_v47 }
 0x218   :  { %320 = vmatmul.msk.f32.vlgmr.msrb.gmra.mxu3 %vm170_vm4, %v61_v22  ;;  %v95_v22 = vmax.f32 %v93_v14, %v94_v18 }
 0x21a   :  { %v96_v27 = vrot.slane %v95_v22, 1 }
 0x21c   :  { %v133_v26 = vpop.permute.xlu0 %132  ;;  %v97_v32 = vmax.f32 %v95_v22, %v96_v27 }
 0x21d   :  { %v135_v29 = vsel %vm110_vm3, %v119_v28, %v133_v26 }
 0x21e   :  { %v137_v34 = vrot.slane %v135_v29, 7  ;;  %v111_v36 = vsel %vm110_vm3, %v97_v32, %v108_v31 }
 0x220   :  { %v140_v38 = vsel %vm139_vm9, %v111_v36, %v137_v34 }
 0x221   :  { %v291_v43 = vmax.f32 %v140_v38, 0.0 }
 0x29b   :  { %v233_v48 = vpop.f32.mrf.mxu3 }
 0x29c   :  { %v234_v49 = vadd.f32 %v233_v48, %v212_v47 }
 0x29e   :  { %v236_v51 = vmul.f32 %v234_v49, %v210_v46  ;;  %v290_v46 = vmax.f32 %v289_v39, 0.0 }
 0x2a0   :  { %v240_v52 = vadd.f32 %v325_v50, %v236_v51  ;;  %v292_v51 = vadd.f32 %v291_v43, %v290_v46 }
 0x2a2   :  { %v241_v53 = vmax.f32 %v240_v52, 0.0 }
 0x2a4   :  { %v249_v54 = vsel %vm90_vm2, %v241_v53, 0.0  ;;  %v270_v55 = vrot.slane %v241_v53, 2  ;;  %v262_v13 = vsel %vm112_vm8, %v241_v53, -inf  ;;  %v242_v16 = vsel %vm90_vm2, %v241_v53, -inf }
 0x2a5   :  { %v250_v56 = vrot.slane %v249_v54, 4  ;;  %v263_v17 = vrot.slane %v262_v13, 4  ;;  %v243_v20 = vrot.slane %v242_v16, 4 }
 0x2a6   :  { %v272_v57 = vsel %vm90_vm2, %v270_v55, 0.0 }
 0x2a7   :  { %v251_v58 = vadd.f32 %v250_v56, %v249_v54  ;;  %v273_v59 = vrot.slane %v272_v57, 4  ;;  %v264_v21 = vmax.f32 %v262_v13, %v263_v17  ;;  %v244_v24 = vmax.f32 %v242_v16, %v243_v20 }
 0x2a9   :  { %v252_v60 = vrot.slane %v251_v58, 2  ;;  %v274_v61 = vadd.f32 %v273_v59, %v272_v57  ;;  %v265_v25 = vrot.slane %v264_v21, 2  ;;  %v245_v9 = vrot.slane %v244_v24, 2 }
 0x2ab   :  { %v253_v62 = vadd.f32 %v252_v60, %v251_v58  ;;  %v275_v63 = vrot.slane %v274_v61, 2  ;;  %v266_v30 = vmax.f32 %v264_v21, %v265_v25  ;;  %v246_v33 = vmax.f32 %v244_v24, %v245_v9 }
 0x2ad   :  { %v254_v0 = vrot.slane %v253_v62, 1  ;;  %v276_v1 = vadd.f32 %v275_v63, %v274_v61  ;;  %v267_v35 = vrot.slane %v266_v30, 1  ;;  %v247_v37 = vrot.slane %v246_v33, 1 }
 0x2af   :  { %v255_v2 = vadd.f32 %v254_v0, %v253_v62  ;;  %v277_v3 = vrot.slane %v276_v1, 1  ;;  %v268_v40 = vmax.f32 %v266_v30, %v267_v35  ;;  %v248_v44 = vmax.f32 %v246_v33, %v247_v37 }
 0x2b1   :  { %v256_v4 = vmul.f32 0.5, %v255_v2  ;;  %v278_v5 = vadd.f32 %v277_v3, %v276_v1 }
 0x2b3   :  { %258 = vrot.lane.b32.xlu2 %v256_v4, %s354_s8  ;;  %v279_v6 = vmul.f32 0.5, %v278_v5 }
 0x2b5   :  { %281 = vrot.lane.b32.xlu1 %v279_v6, %s354_s8 }
 0x30d   :  { %v259_v41 = vpop.permute.xlu2 %258 }
 0x30e   :  { %v261_v48 = vsel %vm110_vm3, %v248_v44, %v259_v41 }
 0x327   :  { %v282_v42 = vpop.permute.xlu1 %281 }
 0x328   :  { %v284_v45 = vsel %vm110_vm3, %v268_v40, %v282_v42 }
 0x329   :  { %v286_v47 = vrot.slane %v284_v45, 7 }
 0x32b   :  { %v288_v49 = vsel %vm139_vm9, %v261_v48, %v286_v47 }
 0x32c   :  { %v293_v50 = vmax.f32 %v288_v49, 0.0 }
 0x32e   :  { %v294_v52 = vadd.f32 %v293_v50, %v292_v51 }
 0x330   :  { %296 = vst.msk [vmem:[#allocation2] sm:$0x3] %vm295_vm10, %v294_v52 }
 0x331   :  { %307 = dma.vmem_to_hbm [thread:$0]  %s303_s12, 32, %s305_s15, [#allocation3]  }
 0x332   :  { %352 = dma.done.wait [#allocation3], 32  }
 0x333   :  { %353 = vsyncadd [#allocation3], 4294967264 }
 0x334   :  { %312 = vsyncpa [#allocation3], 1 }

</bundles_post_ra>
